<compile_context>
chip_gen: v6e
topology: v6e:2x2x1
jax: 0.10.0
libtpu: 0.0.40
codegen_flags: <defaults>
</compile_context>

<pallas_src>
import jax
import jax.numpy as jnp
from jax.experimental import pallas as pl
from jax.experimental.pallas import tpu as pltpu


def _round_up(x, m):
    return ((x + m - 1) // m) * m


def _choose_tile(p, tile_cap):
    """Pick a lane-dense pixel tile (multiple of 128) minimizing padding waste."""
    tile_cap = max(128, (tile_cap // 128) * 128)
    p128 = _round_up(p, 128)
    if p128 <= tile_cap:
        return p128                       # one tile covers P, padding < 128
    lo = min(512, tile_cap)
    best_t = tile_cap
    best_pad = _round_up(p, tile_cap) - p
    t = tile_cap
    while t >= lo and best_pad >= 128:
        pad = _round_up(p, t) - p
        if pad < best_pad:
            best_t, best_pad = t, pad
        t -= 128
    return best_t


def _lin_kernel(x_ref, w_ref, shift_ref, o_ref):
    # x_ref:     (B_blk, C_in, TP)   pixel tile for B_blk batch elements
    # w_ref:     (C_out, C_in)       1x1-conv weight, BN scale folded (maybe bf16)
    # shift_ref: (C_out, 1)          folded BN shift (includes conv bias), f32
    # o_ref:     (B_blk, C_out, TP)
    w = w_ref[...]
    shift = shift_ref[...]
    for bi in range(x_ref.shape[0]):       # small static unroll (<= 16)
        xb = x_ref[bi]
        if xb.dtype != w.dtype:
            xb = xb.astype(w.dtype)        # bf16 MXU inputs, f32 accumulation
        y = jnp.dot(w, xb, preferred_element_type=jnp.float32)
        y = y + shift
        o_ref[bi] = jnp.maximum(y, 0.0).astype(o_ref.dtype)


def lin_forward(x_nchw, weight, bias, gamma, beta, running_mean, running_var,
                eps=1e-5, tile_p=None, matmul_dtype=None):
    """Fused Conv2d(1x1) + BatchNorm2d(eval) + ReLU, native NCHW.

    x_nchw:  (N, C_in, H, W) float32 or bfloat16
    weight:  (C_out, C_in, 1, 1) conv weight (PyTorch layout)
    bias:    (C_out,)
    gamma, beta, running_mean, running_var: (C_out,)
    returns: (N, C_out, H, W), dtype of x
    """
    n, c_in, h, w = x_nchw.shape
    c_out = weight.shape[0]
    p = h * w
    out_dtype = x_nchw.dtype

    # ---- generation-aware VMEM budget ----
    try:
        vmem_cap = int(pltpu.get_tpu_info().vmem_capacity_bytes)
    except Exception:
        vmem_cap = 64 << 20                 # conservative (v7x) fallback
    budget = int(0.8 * vmem_cap)            # ~51 MiB on v7x, ~102 MiB on v5e/v6e
    if tile_p is None:
        tile_p = 4096 if vmem_cap >= (100 << 20) else 2048

    # ---- MXU input dtype: bf16 for wide layers (v5e f32 MXU multi-pass) ----
    if x_nchw.dtype == jnp.bfloat16:
        mm_dtype = jnp.bfloat16
    elif matmul_dtype is not None:
        mm_dtype = matmul_dtype
    elif c_in >= 256:
        mm_dtype = jnp.bfloat16
    else:
        mm_dtype = x_nchw.dtype

    # ---- parameter folding (tiny, plain JAX) ----
    inv_std = 1.0 / jnp.sqrt(running_var.astype(jnp.float32) + eps)
    scale = gamma.astype(jnp.float32) * inv_std                      # (C_out,)
    w_folded = (weight.reshape(c_out, c_in).astype(jnp.float32)
                * scale[:, None])                                    # (C_out, C_in)
    shift = (beta.astype(jnp.float32)
             + (bias.astype(jnp.float32) - running_mean.astype(jnp.float32))
             * scale).reshape(c_out, 1)

    # Pad C_out to the f32 sublane granule (8) when the extra output write-back
    # is small (<= 12.5%); avoids partially-filled vregs / short MXU rows.
    c_out_p = _round_up(c_out, 8)
    if c_out_p != c_out and (c_out_p - c_out) * 8 > c_out:
        c_out_p = c_out
    if c_out_p != c_out:
        w_folded = jnp.pad(w_folded, ((0, c_out_p - c_out), (0, 0)))
        shift = jnp.pad(shift, ((0, c_out_p - c_out), (0, 0)))
    w_folded = w_folded.astype(mm_dtype)

    x_item = jnp.dtype(x_nchw.dtype).itemsize
    out_item = jnp.dtype(out_dtype).itemsize
    w_item = jnp.dtype(mm_dtype).itemsize

    # Resident (grid-invariant) VMEM: weight + shift (double-buffered by Pallas).
    resident = 2 * c_out_p * c_in * w_item + 2 * _round_up(c_out_p, 8) * 128 * 4

    # ---- pixel tile: minimize padding waste under the VMEM budget ----
    per_pixel = 2 * (c_in * x_item + c_out_p * out_item)   # double-buffered x+out
    if budget > resident + per_pixel * 128:
        tile_cap_vmem = ((budget - resident) // per_pixel // 128) * 128
    else:
        tile_cap_vmem = 128
        # TODO(synk): for very wide layers (weight alone ~ VMEM budget, e.g.
        # C_in=C_out>=4096 on v7x) split C_in onto a third "arbitrary" grid
        # axis with a f32 VMEM accumulator instead of keeping W resident.
    tile = _choose_tile(p, min(tile_p, tile_cap_vmem))
    p_pad = _round_up(p, tile)

    # ---- batch blocking: amortize ~0.35us/step when the working set is tiny ----
    step_bytes = (c_in * x_item + c_out_p * out_item) * tile
    b_blk = 1
    if step_bytes < (1 << 20):
        for d in range(min(n, 16), 0, -1):
            if n % d == 0 and step_bytes * d <= (2 << 20):
                b_blk = d
                break
    while b_blk > 1 and resident + 2 * b_blk * step_bytes > budget:
        b_blk -= 1
        while n % b_blk:
            b_blk -= 1

    # ---- native-NCHW view: pixels on the lane (last) axis ----
    x3d = x_nchw.reshape(n, c_in, p)
    if p_pad != p:
        x3d = jnp.pad(x3d, ((0, 0), (0, 0), (0, p_pad - p)))

    nb = n // b_blk
    npt = p_pad // tile

    # Put the longer axis first so v7x's 2 TensorCores get a balanced split.
    if npt >= nb:
        grid = (npt, nb)
        x_spec = pl.BlockSpec((b_blk, c_in, tile), lambda i, b: (b, 0, i))
        o_spec = pl.BlockSpec((b_blk, c_out_p, tile), lambda i, b: (b, 0, i))
        w_spec = pl.BlockSpec((c_out_p, c_in), lambda i, b: (0, 0))
        s_spec = pl.BlockSpec((c_out_p, 1), lambda i, b: (0, 0))
    else:
        grid = (nb, npt)
        x_spec = pl.BlockSpec((b_blk, c_in, tile), lambda b, i: (b, 0, i))
        o_spec = pl.BlockSpec((b_blk, c_out_p, tile), lambda b, i: (b, 0, i))
        w_spec = pl.BlockSpec((c_out_p, c_in), lambda b, i: (0, 0))
        s_spec = pl.BlockSpec((c_out_p, 1), lambda b, i: (0, 0))

    footprint = resident + 2 * b_blk * step_bytes
    vmem_limit = int(min(max(footprint + (2 << 20), 16 << 20),
                         int(0.95 * vmem_cap)))

    cost = pl.CostEstimate(
        flops=2 * n * p_pad * c_in * c_out_p,
        transcendentals=0,
        bytes_accessed=int(n * p_pad * c_in * x_item
                           + n * p_pad * c_out_p * out_item
                           + c_out_p * c_in * w_item + c_out_p * 4),
    )

    out3d = pl.pallas_call(
        _lin_kernel,
        out_shape=jax.ShapeDtypeStruct((n, c_out_p, p_pad), out_dtype),
        grid_spec=pltpu.PrefetchScalarGridSpec(
            num_scalar_prefetch=0,
            grid=grid,
            in_specs=[x_spec, w_spec, s_spec],
            out_specs=o_spec,
        ),
        compiler_params=pltpu.CompilerParams(
            dimension_semantics=("parallel", "parallel"),
            vmem_limit_bytes=vmem_limit),
        cost_estimate=cost,
    )(x3d, w_folded, shift)

    # NOTE: keep these slices — padded pixel columns / channel rows hold garbage.
    if p_pad != p or c_out_p != c_out:
        out3d = out3d[:, :c_out, :p]
    return out3d.reshape(n, c_out, h, w)


if __name__ == "__main__":
    # Small shapes consistent with the module's forward: NCHW input.
    N, C_IN, C_OUT, H, W = 2, 4, 8, 16, 16

    key = jax.random.PRNGKey(0)
    kx, kw, kb, kg, kbe, km, kv = jax.random.split(key, 7)

    x = jax.random.normal(kx, (N, C_IN, H, W), dtype=jnp.float32)
    weight = jax.random.normal(kw, (C_OUT, C_IN, 1, 1), dtype=jnp.float32) * 0.1
    bias = jax.random.normal(kb, (C_OUT,), dtype=jnp.float32) * 0.1
    gamma = 1.0 + 0.1 * jax.random.normal(kg, (C_OUT,), dtype=jnp.float32)
    beta = 0.1 * jax.random.normal(kbe, (C_OUT,), dtype=jnp.float32)
    running_mean = 0.1 * jax.random.normal(km, (C_OUT,), dtype=jnp.float32)
    running_var = jnp.abs(1.0 + 0.1 * jax.random.normal(kv, (C_OUT,), dtype=jnp.float32))

    out = lin_forward(x, weight, bias, gamma, beta, running_mean, running_var)
    jax.block_until_ready(out)

    # Reference check in plain JAX (same eval-mode BN semantics).
    conv = jnp.einsum("nchw,oc->nohw", x, weight.reshape(C_OUT, C_IN)) \
        + bias[None, :, None, None]
    bn = (conv - running_mean[None, :, None, None]) \
        / jnp.sqrt(running_var[None, :, None, None] + 1e-5) \
        * gamma[None, :, None, None] + beta[None, :, None, None]
    ref = jnp.maximum(bn, 0.0)
    assert out.shape == (N, C_OUT, H, W)
    assert jnp.allclose(out, ref, atol=1e-4, rtol=1e-4)

    print("KERNEL_OK")
</pallas_src>

<mosaic_0001>
module attributes {stable_mosaic.version = 11 : i64} {
  func.func @_lin_kernel(%arg0: i32, %arg1: i32, %arg2: memref<2x4x256xf32, #tpu.memory_space<vmem>>, %arg3: memref<8x4xf32, #tpu.memory_space<vmem>>, %arg4: memref<8x1xf32, #tpu.memory_space<vmem>>, %arg5: memref<2x8x256xf32, #tpu.memory_space<vmem>>) attributes {dimension_semantics = [#tpu.dimension_semantics<parallel>, #tpu.dimension_semantics<parallel>], iteration_bounds = array<i64: 1, 1>, scalar_prefetch = 0 : i64, scratch_operands = 0 : i64, tpu.core_type = #tpu.core_type<tc>, window_params = [{transform_indices = @transform_0, window_bounds = array<i64: 2, 4, 256>}, {pipeline_mode = #tpu.pipeline_mode<synchronous>, transform_indices = @transform_1, window_bounds = array<i64: 8, 4>}, {pipeline_mode = #tpu.pipeline_mode<synchronous>, transform_indices = @transform_2, window_bounds = array<i64: 8, 1>}, {transform_indices = @transform_3, window_bounds = array<i64: 2, 8, 256>}]} {
    %c0 = arith.constant 0 : index
    %c0_0 = arith.constant 0 : index
    %0 = vector.load %arg3[%c0, %c0_0] : memref<8x4xf32, #tpu.memory_space<vmem>>, vector<8x4xf32>
    %c0_1 = arith.constant 0 : index
    %c0_2 = arith.constant 0 : index
    %1 = vector.load %arg4[%c0_1, %c0_2] : memref<8x1xf32, #tpu.memory_space<vmem>>, vector<8x1xf32>
    %c0_3 = arith.constant 0 : index
    %c0_4 = arith.constant 0 : index
    %c0_5 = arith.constant 0 : index
    %2 = vector.load %arg2[%c0_3, %c0_4, %c0_5] : memref<2x4x256xf32, #tpu.memory_space<vmem>>, vector<1x4x256xf32>
    %3 = vector.shape_cast %2 : vector<1x4x256xf32> to vector<4x256xf32>
    %cst = arith.constant dense<0.000000e+00> : vector<8x256xf32>
    %4 = tpu.matmul %0, %3, %cst {dimension_numbers = #tpu.dot_dimension_numbers<[1], [0], [0], [1], [0, 0, 1, 1], [], []>} : vector<8x4xf32>, vector<4x256xf32>, vector<8x256xf32> -> vector<8x256xf32>
    %5 = vector.broadcast %1 : vector<8x1xf32> to vector<8x256xf32>
    %6 = arith.addf %4, %5 : vector<8x256xf32>
    %cst_6 = arith.constant 0.000000e+00 : f32
    %7 = vector.broadcast %cst_6 : f32 to vector<8x256xf32>
    %8 = arith.maximumf %6, %7 : vector<8x256xf32>
    %c0_7 = arith.constant 0 : index
    %c0_8 = arith.constant 0 : index
    %c0_9 = arith.constant 0 : index
    %9 = vector.load %arg5[%c0_7, %c0_8, %c0_9] : memref<2x8x256xf32, #tpu.memory_space<vmem>>, vector<1x8x256xf32>
    %10 = vector.shape_cast %9 : vector<1x8x256xf32> to vector<8x256xf32>
    %11 = vector.shape_cast %8 : vector<8x256xf32> to vector<1x8x256xf32>
    tpu.vector_store %arg5[%c0_7, %c0_8, %c0_9], %11 {strides = array<i32>} : memref<2x8x256xf32, #tpu.memory_space<vmem>>, vector<1x8x256xf32>,
    %c1 = arith.constant 1 : index
    %c0_10 = arith.constant 0 : index
    %c0_11 = arith.constant 0 : index
    %12 = vector.load %arg2[%c1, %c0_10, %c0_11] : memref<2x4x256xf32, #tpu.memory_space<vmem>>, vector<1x4x256xf32>
    %13 = vector.shape_cast %12 : vector<1x4x256xf32> to vector<4x256xf32>
    %cst_12 = arith.constant dense<0.000000e+00> : vector<8x256xf32>
    %14 = tpu.matmul %0, %13, %cst_12 {dimension_numbers = #tpu.dot_dimension_numbers<[1], [0], [0], [1], [0, 0, 1, 1], [], []>} : vector<8x4xf32>, vector<4x256xf32>, vector<8x256xf32> -> vector<8x256xf32>
    %15 = vector.broadcast %1 : vector<8x1xf32> to vector<8x256xf32>
    %16 = arith.addf %14, %15 : vector<8x256xf32>
    %cst_13 = arith.constant 0.000000e+00 : f32
    %17 = vector.broadcast %cst_13 : f32 to vector<8x256xf32>
    %18 = arith.maximumf %16, %17 : vector<8x256xf32>
    %c1_14 = arith.constant 1 : index
    %c0_15 = arith.constant 0 : index
    %c0_16 = arith.constant 0 : index
    %19 = vector.load %arg5[%c1_14, %c0_15, %c0_16] : memref<2x8x256xf32, #tpu.memory_space<vmem>>, vector<1x8x256xf32>
    %20 = vector.shape_cast %19 : vector<1x8x256xf32> to vector<8x256xf32>
    %21 = vector.shape_cast %18 : vector<8x256xf32> to vector<1x8x256xf32>
    tpu.vector_store %arg5[%c1_14, %c0_15, %c0_16], %21 {strides = array<i32>} : memref<2x8x256xf32, #tpu.memory_space<vmem>>, vector<1x8x256xf32>,
    return
  }
  func.func @transform_0(%arg0: i32, %arg1: i32) -> (i32, i32, i32) {
    %c0_i32 = arith.constant 0 : i32
    %c0_i32_0 = arith.constant 0 : i32
    return %arg1, %c0_i32, %arg0 : i32, i32, i32
  }
  func.func @transform_1(%arg0: i32, %arg1: i32) -> (i32, i32) {
    %c0_i32 = arith.constant 0 : i32
    %c0_i32_0 = arith.constant 0 : i32
    %c0_i32_1 = arith.constant 0 : i32
    return %c0_i32, %c0_i32_0 : i32, i32
  }
  func.func @transform_2(%arg0: i32, %arg1: i32) -> (i32, i32) {
    %c0_i32 = arith.constant 0 : i32
    %c0_i32_0 = arith.constant 0 : i32
    %c0_i32_1 = arith.constant 0 : i32
    return %c0_i32, %c0_i32_0 : i32, i32
  }
  func.func @transform_3(%arg0: i32, %arg1: i32) -> (i32, i32, i32) {
    %c0_i32 = arith.constant 0 : i32
    %c0_i32_0 = arith.constant 0 : i32
    return %arg1, %c0_i32, %arg0 : i32, i32, i32
  }
}

</mosaic_0001>

<bundles_post_ra>
// kernel: tpu_custom_call.1
= control target key start
LH: loop header
LB: loop body
LE: loop exit
PB: predicated region body
PF: predicated region fallthrough
CT: control target
= control target key end

     0   :  { %vm29_vm0 = vcmask 1043456   ;;  %v246_v4 = vmov 0.0   ;;  %s290_s0 = inlined_call_operand.vmem [shape: f32[2,4,256], index: 0, kind: input, shape index: {}]   ;;  %s291_s1 = inlined_call_operand.vmem [shape: f32[8,4], index: 1, kind: input, shape index: {}]   ;;  %s292_s2 = inlined_call_operand.vmem [shape: f32[8,1], index: 2, kind: input, shape index: {}]   ;;  %s293_s3 = inlined_call_operand.hbm [shape: f32[2,8,256], index: 3, kind: output, shape index: {}]  }
   0x1   :  { %v17_v0 = vld [vmem:[%s290_s0] sm:$0xff]  ;;  %v212_v1 = vld [vmem:[%s290_s0 + $0x8] sm:$0xff]  ;;  %98 = vmatprep.mubr.f32.mxu0 %v246_v4  ;;  %181 = vmatprep.mubr.f32.mxu1 %v246_v4 }
   0x2   :  { %v24_v2 = vcombine.high %v17_v0, %v17_v0  ;;  %v112_v3 = vcombine.high %v212_v1, %v212_v1 }
   0x3   :  { %8 = vsyncpa [#allocation3], 0  ;;  %v15_v5 = vld [vmem:[%s291_s1] sm:$0xff]  ;;  %vm25_vm1 = vcmask 31744   ;;  %v247_v6 = vmov 0   ;;  %s248_s0 = smov [#allocation2]  }
   0x4   :  { %221 = vset.pattern.permute.xlu0 %v247_v6  ;;  %209 = vmatprep.subr.msk.mxu0 %vm29_vm0, %v24_v2  ;;  %v16_v7 = vld [vmem:[%s292_s2] sm:$0xff]  ;;  %s198_s1 = sshll.u32 %s248_s0, 4  ;;  %s199_s1 = int_to_ptr.vmem [resolvable:$true] %s198_s1 }
   0x5   :  { %213 = vmatprep.subr.msk.mxu1 %vm29_vm0, %v112_v3  ;;  %210 = vmatpush1.msk.msra.mxu0 %vm29_vm0, %v17_v0  ;;  %s224_s2 = scalar_lea.vmem %s199_s1, 512  ;;  %p229_p1 = scmp.lt.s32.totalorder %s199_s1, %s199_s1 }
   0x6   :  { %214 = vmatpush1.msk.msra.mxu1 %vm29_vm0, %v212_v1  ;;  %211 = vmatmul.mubr.msk.f32.vlgmr.msra.gmra.mxu0 %vm25_vm1, %v15_v5  ;;  %p225_p0 = scmp.ne.s32.totalorder %s199_s1, %s224_s2  ;;  %p230_p2 = scmp.lt.s32.totalorder %s224_s2, %s224_s2 }
   0x7   :  { %215 = vmatmul.mubr.msk.f32.vlgmr.msra.gmra.mxu1 %vm25_vm1, %v15_v5  ;;  %20 = vperm.xlu0 %221, %v16_v7  }
   0x8   :  { %p231_p3 = por %p230_p2, %p229_p1 }
   0xa   :  { %p232_p4 = pnand %p231_p3, %p225_p0 }
  0x82   :  { %v21_v8 = vpop.permute.xlu0 %20 }
  0xc6   :  { %v100_v9 = vpop.f32.mrf.mxu0 }
  0xc7   :  { %v183_v10 = vpop.f32.mrf.mxu1  ;;  %v101_v11 = vadd.f32 %v100_v9, %v21_v8 }
  0xc8   :  { %v184_v12 = vadd.f32 %v183_v10, %v21_v8  ;;  %v102_v13 = vpop.f32.mrf.mxu0 }
  0xc9   :  { %v185_v14 = vpop.f32.mrf.mxu1  ;;  %v105_v15 = vmax.f32 %v101_v11, 0.0  ;;  %v103_v17 = vadd.f32 %v102_v13, %v21_v8 }
  0xca   :  { %v188_v16 = vmax.f32 %v184_v12, 0.0  ;;  %v186_v18 = vadd.f32 %v185_v14, %v21_v8 }
  0xcb   :  { %107 = vst [vmem:[#allocation2] sm:$0xff] %v105_v15  ;;  %v106_v19 = vmax.f32 %v103_v17, 0.0 }
  0xcc   :  { %191 = vst [vmem:[#allocation2 + $0x10] sm:$0xff] %v188_v16  ;;  %v189_v20 = vmax.f32 %v186_v18, 0.0 }
  0xcd   :  { %108 = vst [vmem:[#allocation2 + $0x8] sm:$0xff] %v106_v19 }
  0xce   :  { %192 = vst [vmem:[#allocation2 + $0x18] sm:$0xff] %v189_v20 }
  0xcf   :  { %235 = shalt.err (!%p232_p4)
}
  0xd0   :  { %s249_s20 = smov 256   ;;  %s250_s21 = smov 16  }
  0xd1   :  { %204 = dma.vmem_to_hbm [thread:$0]  %s199_s1, 512, %s293_s3, [#allocation3], %s249_s20, %s249_s20, %s250_s21  }
  0xd2   :  { %244 = dma.done.wait [#allocation3], 512  }
  0xd3   :  { %245 = vsyncadd [#allocation3], 4294966784 }
  0xd4   :  { %208 = vsyncpa [#allocation3], 1 }

</bundles_post_ra>
